<compile_context>
chip_gen: v7x
topology: tpu7x:2x2x1
jax: 0.10.0
libtpu: 0.0.40
codegen_flags: <defaults>
</compile_context>

<pallas_src>
import functools

import jax
import jax.numpy as jnp
from jax import lax
from jax.experimental import pallas as pl
from jax.experimental.pallas import tpu as pltpu


# Rows per grid step.  Feature widths here are tiny (<= cin + H*C columns), so
# even a 1024-row double-buffered tile is well under a few MiB of VMEM.
_MAX_ROW_TILE = 1024
# Budget against v7x's 64 MiB physical VMEM (leave headroom); v5e/v6e have
# 128 MiB so this is safe everywhere.
_VMEM_LIMIT_BYTES = 48 * 1024 * 1024


# ------------------------------ small helpers -------------------------------

def _round_up(n, m):
    return (n + m - 1) // m * m


def _row_tile(n):
    # Biggest 8-aligned tile <= _MAX_ROW_TILE; no wrapper padding -- the grid
    # uses cdiv and Pallas masks the ragged last block on writeback.
    return min(_MAX_ROW_TILE, _round_up(max(n, 8), 8))


def _row2(i):          # row-tiled 2D block
    return (i, 0)


def _const2(i):        # resident (weights) 2D block
    return (0, 0)


def _cparams(*sems):
    return pltpu.CompilerParams(dimension_semantics=sems,
                                vmem_limit_bytes=_VMEM_LIMIT_BYTES)


# ----------------------------- Pallas kernels ------------------------------

def _node_proj_kernel(x_ref, emb_ref, wx_ref, we_ref, b_ref, wlr_ref, blr_ref,
                      s_ref, d_ref, *, hc):
    f32, bf16 = jnp.float32, jnp.bfloat16
    x = x_ref[...]
    # lin1_x folded into lin1_concat (no nonlinearity between them):
    #   relu(concat([x@W1x + b1x, emb]) @ Wc + bc)
    #     == relu(x @ (W1x @ Wc_top) + emb @ Wc_bot + (b1x @ Wc_top + bc))
    h = (jnp.dot(x.astype(bf16), wx_ref[...], preferred_element_type=f32)
         + jnp.dot(emb_ref[...].astype(bf16), we_ref[...],
                   preferred_element_type=f32)
         + b_ref[...])
    h = jnp.maximum(h, 0.0)
    # [lin_l | lin_r] fused into one wide matmul (weights concatenated on N).
    xlr = jnp.dot(h.astype(bf16), wlr_ref[...],
                  preferred_element_type=f32) + blr_ref[...]
    # Emit the per-node gather tables directly: [x | x_l] and [x | x_r].
    s_ref[...] = jnp.concatenate([x, xlr[:, :hc]], axis=1)
    d_ref[...] = jnp.concatenate([x, xlr[:, hc:]], axis=1)


def node_projection(x, emb, wx, we, b, wlr, blr, hc):
    n, cin = x.shape
    ch = emb.shape[1]
    tile = _row_tile(n)
    out_w = cin + hc
    return pl.pallas_call(
        functools.partial(_node_proj_kernel, hc=hc),
        out_shape=(jax.ShapeDtypeStruct((n, out_w), jnp.float32),
                   jax.ShapeDtypeStruct((n, out_w), jnp.float32)),
        grid=(pl.cdiv(n, tile),),
        in_specs=[
            pl.BlockSpec((tile, cin), _row2),
            pl.BlockSpec((tile, ch), _row2),
            pl.BlockSpec(wx.shape, _const2),
            pl.BlockSpec(we.shape, _const2),
            pl.BlockSpec(b.shape, _const2),
            pl.BlockSpec(wlr.shape, _const2),
            pl.BlockSpec(blr.shape, _const2),
        ],
        out_specs=(pl.BlockSpec((tile, out_w), _row2),
                   pl.BlockSpec((tile, out_w), _row2)),
        compiler_params=_cparams("parallel"),
    )(x, emb, wx, we, b, wlr, blr)


def _edge_logits_kernel(s_ref, d_ref, w1e_ref, b1e_ref, we_ref, att_ref,
                        o_ref, *, cin, slope):
    f32, bf16 = jnp.float32, jnp.bfloat16
    s_cat = s_ref[...]          # [T, cin + HC]  == [x[src] | x_l[src]]
    d_cat = d_ref[...]          # [T, cin + HC]  == [x[dst] | x_r[dst]]
    xs, x_j = s_cat[:, :cin], s_cat[:, cin:]
    xd, x_i = d_cat[:, :cin], d_cat[:, cin:]
    # x_edge = x[src] * x[dst]; lin1_edge + ReLU; lin_edge (no bias)
    xe = xs * xd
    he = jnp.maximum(
        jnp.dot(xe.astype(bf16), w1e_ref[...], preferred_element_type=f32)
        + b1e_ref[...], 0.0)
    ea = jnp.dot(he.astype(bf16), we_ref[...], preferred_element_type=f32)
    # GATConvW message: leaky_relu(x_i + x_j + edge_attr)
    m = x_i + x_j + ea
    m = jnp.where(m >= 0.0, m, slope * m)
    # per-head (sum over C of m*att) via block-diagonal att matrix [HC, H]
    o_ref[...] = jnp.dot(m.astype(bf16), att_ref[...],
                         preferred_element_type=f32)


def edge_attention_logits(s_cat, d_cat, w1e, b1e, we, att_mat, *, cin, slope):
    e, w = s_cat.shape
    heads = att_mat.shape[1]
    tile = _row_tile(e)
    return pl.pallas_call(
        functools.partial(_edge_logits_kernel, cin=cin, slope=slope),
        out_shape=jax.ShapeDtypeStruct((e, heads), jnp.float32),
        grid=(pl.cdiv(e, tile),),
        in_specs=[
            pl.BlockSpec((tile, w), _row2),
            pl.BlockSpec((tile, w), _row2),
            pl.BlockSpec(w1e.shape, _const2),
            pl.BlockSpec(b1e.shape, _const2),
            pl.BlockSpec(we.shape, _const2),
            pl.BlockSpec(att_mat.shape, _const2),
        ],
        out_specs=pl.BlockSpec((tile, heads), _row2),
        compiler_params=_cparams("parallel"),
    )(s_cat, d_cat, w1e, b1e, we, att_mat)


def _edge_scalar_kernel(s_ref, p_ref, den_ref, pool_ref, o_ref, *, cin):
    f32, bf16 = jnp.float32, jnp.bfloat16
    x_j = s_ref[...][:, cin:]                                 # [T, HC]
    # lin2 folded into the message:
    #   (x_j * alpha_broadcast) . w2  ==  sum_h alpha[:,h] * (x_j @ pool_w2)[:,h]
    y = jnp.dot(x_j.astype(bf16), pool_ref[...], preferred_element_type=f32)
    # softmax denominator reciprocal on the EUP (approx; documented deviation)
    inv = pl.reciprocal(den_ref[...] + 1e-16, approx=True)
    o_ref[...] = jnp.sum(p_ref[...] * inv * y, axis=-1, keepdims=True)


def edge_message_scalar(s_cat, p, den, pool_w2, *, cin):
    e, w = s_cat.shape
    heads = p.shape[1]
    tile = _row_tile(e)
    return pl.pallas_call(
        functools.partial(_edge_scalar_kernel, cin=cin),
        out_shape=jax.ShapeDtypeStruct((e, 1), jnp.float32),
        grid=(pl.cdiv(e, tile),),
        in_specs=[
            pl.BlockSpec((tile, w), _row2),
            pl.BlockSpec((tile, heads), _row2),
            pl.BlockSpec((tile, heads), _row2),
            pl.BlockSpec(pool_w2.shape, _const2),
        ],
        out_specs=pl.BlockSpec((tile, 1), _row2),
        compiler_params=_cparams("parallel"),
    )(s_cat, p, den, pool_w2)


def _output_head_kernel(x1_ref, g_ref, be_ref, w3_ref, b3_ref, w4_ref, b4_ref,
                        o2_ref, o1_ref, *, eps):
    f32, bf16 = jnp.float32, jnp.bfloat16
    x1 = x1_ref[...]                                          # [Tb, G]
    # LayerNorm(num_gene)
    mu = jnp.mean(x1, axis=-1, keepdims=True)
    var = jnp.mean(jnp.square(x1 - mu), axis=-1, keepdims=True)
    x1n = (x1 - mu) * lax.rsqrt(var + eps) * g_ref[...] + be_ref[...]
    # lin3 + ReLU  (bf16 weights, f32 accumulation)
    x2 = jnp.maximum(
        jnp.dot(x1n.astype(bf16), w3_ref[...], preferred_element_type=f32)
        + b3_ref[...], 0.0)
    # TODO(synk): dropout(p=0.5) on x2 skipped (eval-mode semantics).
    x2 = jnp.dot(x2.astype(bf16), w4_ref[...],
                 preferred_element_type=f32) + b4_ref[...]

    def _log_softmax(v):
        m = jnp.max(v, axis=-1, keepdims=True)
        return v - (m + jnp.log(jnp.sum(jnp.exp(v - m), axis=-1, keepdims=True)))

    o2_ref[...] = _log_softmax(x2)
    o1_ref[...] = _log_softmax(x1n)


def output_head(x1, ln_w, ln_b, w3, b3, w4, b4, *, eps=1e-5):
    B, G = x1.shape
    CT = w4.shape[1]
    tb = B if B < 8 else 8                  # grid over batch rows (megacore)
    return pl.pallas_call(
        functools.partial(_output_head_kernel, eps=eps),
        out_shape=(jax.ShapeDtypeStruct((B, CT), jnp.float32),
                   jax.ShapeDtypeStruct((B, G), jnp.float32)),
        grid=(pl.cdiv(B, tb),),
        in_specs=[
            pl.BlockSpec((tb, G), _row2),
            pl.BlockSpec((1, G), _const2),
            pl.BlockSpec((1, G), _const2),
            pl.BlockSpec((G, G), _const2),
            pl.BlockSpec((1, G), _const2),
            pl.BlockSpec((G, CT), _const2),
            pl.BlockSpec((1, CT), _const2),
        ],
        out_specs=(pl.BlockSpec((tb, CT), _row2),
                   pl.BlockSpec((tb, G), _row2)),
        compiler_params=_cparams("parallel"),
    )(x1, ln_w, ln_b, w3, b3, w4, b4)


# ------------------------------ model wrapper -------------------------------

def init_params(key, input_channels, emb_channels, num_head, num_gene,
                num_celltype, num_nodes):
    del num_nodes
    hidden = emb_channels
    conv_in = 2 * hidden
    C = 2 * hidden                       # GATConvW out_channels
    H = num_head
    HC = H * C
    ks = jax.random.split(key, 10)

    def glorot(k, shape):
        lim = (6.0 / (shape[0] + shape[1])) ** 0.5
        return jax.random.uniform(k, shape, jnp.float32, -lim, lim)

    return dict(
        lin1_x_w=glorot(ks[0], (input_channels, hidden)),
        lin1_x_b=jnp.zeros((hidden,), jnp.float32),
        lin1_edge_w=glorot(ks[1], (input_channels, hidden)),
        lin1_edge_b=jnp.zeros((hidden,), jnp.float32),
        lin1_concat_w=glorot(ks[2], (conv_in, conv_in)),
        lin1_concat_b=jnp.zeros((conv_in,), jnp.float32),
        lin_l_w=glorot(ks[3], (conv_in, HC)),
        lin_l_b=jnp.zeros((HC,), jnp.float32),
        lin_r_w=glorot(ks[4], (conv_in, HC)),
        lin_r_b=jnp.zeros((HC,), jnp.float32),
        lin_edge_w=glorot(ks[5], (hidden, HC)),
        att=glorot(ks[6], (H, C)),
        conv_bias=jnp.zeros((HC,), jnp.float32),
        ln_w=jnp.ones((num_gene,), jnp.float32),
        ln_b=jnp.zeros((num_gene,), jnp.float32),
        lin2_w=glorot(ks[7], (HC, 1)).reshape(HC),
        lin2_b=jnp.zeros((1,), jnp.float32),
        lin3_w=glorot(ks[8], (num_gene, num_gene)),
        lin3_b=jnp.zeros((num_gene,), jnp.float32),
        lin4_w=glorot(ks[9], (num_gene, num_celltype)),
        lin4_b=jnp.zeros((num_celltype,), jnp.float32),
    )


def gat_forward(params, x, edge_index, batch, emb, *,
                heads, out_channels, num_nodes, num_gene):
    del batch  # batchsize derived statically (jit-safe, no host sync)
    if x.ndim == 1:
        x = x.reshape(x.shape[0], 1)
    n_total, cin = x.shape
    H, C = heads, out_channels
    HC = H * C
    batchsize = n_total // num_nodes

    src = edge_index[0]   # j (message source)
    dst = edge_index[1]   # i (aggregation target / softmax segment)

    f32, bf16 = jnp.float32, jnp.bfloat16
    hidden = params['lin1_x_w'].shape[1]

    # ----- wrapper-side weight packing / bf16 pre-cast (tiny, once) -----
    wc_top = params['lin1_concat_w'][:hidden, :]
    wc_bot = params['lin1_concat_w'][hidden:, :]
    wx_fused = (params['lin1_x_w'] @ wc_top).astype(bf16)        # lin1_x folded
    b_fused = (params['lin1_x_b'] @ wc_top
               + params['lin1_concat_b']).reshape(1, -1)
    wce = wc_bot.astype(bf16)
    wlr = jnp.concatenate([params['lin_l_w'], params['lin_r_w']],
                          axis=1).astype(bf16)
    blr = jnp.concatenate([params['lin_l_b'],
                           params['lin_r_b']]).reshape(1, -1)
    w1e = params['lin1_edge_w'].astype(bf16)
    b1e = params['lin1_edge_b'].reshape(1, -1)
    we = params['lin_edge_w'].astype(bf16)

    head_of = jnp.repeat(jnp.arange(H), C)                       # [HC]
    onehot = (head_of[:, None] == jnp.arange(H)[None, :]).astype(f32)  # [HC,H]
    att_mat = (onehot * params['att'].reshape(-1)[:, None]).astype(bf16)
    w2 = params['lin2_w']                                        # [HC]
    pool_w2 = (onehot * w2[:, None]).astype(bf16)                # [HC, H]
    lin2_const = jnp.dot(params['conv_bias'], w2) + params['lin2_b'][0]

    # ----- node-side projections (one fused kernel, emits gather tables) -----
    s_tab, d_tab = node_projection(x, emb, wx_fused, wce, b_fused, wlr, blr, HC)

    # ----- gathers (data-dependent, XLA glue): 2 instead of 4 -----
    s_cat = jnp.take(s_tab, src, axis=0)                         # [E, cin+HC]
    d_cat = jnp.take(d_tab, dst, axis=0)                         # [E, cin+HC]

    # ----- attention logits (fused edge projection + message score) -----
    logits = edge_attention_logits(s_cat, d_cat, w1e, b1e, we, att_mat,
                                   cin=cin, slope=0.2)           # [E, H]

    # ----- segment softmax over edges grouped by target node -----
    # TODO(synk): fuse (sorted edges + scalar-prefetch CSR offsets) to remove
    # the remaining E-sized round trips and both scatter kernels.
    seg_max = jax.ops.segment_max(logits, dst, num_segments=n_total)
    p = jnp.exp(logits - jnp.take(seg_max, dst, axis=0))
    seg_sum = jax.ops.segment_sum(p, dst, num_segments=n_total)
    den = jnp.take(seg_sum, dst, axis=0)

    # TODO(synk): attention dropout(p=0.5) skipped (inference / eval semantics).
    # ----- weighted message with lin2 folded in: one scalar per edge -----
    edge_scalar = edge_message_scalar(s_cat, p, den, pool_w2, cin=cin)  # [E,1]

    # scatter-add per target node of scalars (HC-fold less traffic than E x HC)
    node_scalar = jax.ops.segment_sum(edge_scalar[:, 0], dst,
                                      num_segments=n_total)      # [N]
    # lin2 of (conv_out + conv_bias):  per-node scalar + constant
    x1 = node_scalar + lin2_const
    x1 = x1.reshape(batchsize, num_nodes)[:, num_nodes - num_gene:]  # [B, G]

    # ----- output head: LN + lin3/ReLU + lin4 + both log_softmax heads -----
    return output_head(
        x1,
        params['ln_w'].reshape(1, -1), params['ln_b'].reshape(1, -1),
        params['lin3_w'].astype(bf16), params['lin3_b'].reshape(1, -1),
        params['lin4_w'].astype(bf16), params['lin4_b'].reshape(1, -1),
    )


# ---------------------------------- main ------------------------------------

def build_edges(batchsize, num_nodes):
    srcs, dsts = [], []
    for g in range(batchsize):
        o = g * num_nodes
        for i in range(num_nodes):
            j = (i + 1) % num_nodes
            srcs += [o + i, o + j]
            dsts += [o + j, o + i]
    return jnp.array([srcs, dsts], dtype=jnp.int32)


if __name__ == "__main__":
    input_channels = 4
    emb_channels = 8          # hidden_channels
    num_head = 2
    num_nodes = 8
    num_gene = 4
    num_celltype = 3
    batchsize = 2

    key = jax.random.PRNGKey(0)
    k_x, k_e, k_p = jax.random.split(key, 3)

    n_total = batchsize * num_nodes
    x = jax.random.normal(k_x, (n_total, input_channels), jnp.float32)
    emb = jax.random.normal(k_e, (n_total, emb_channels), jnp.float32)
    edge_index = build_edges(batchsize, num_nodes)            # [2, 32]
    batch = jnp.repeat(jnp.arange(batchsize, dtype=jnp.int32), num_nodes)

    params = init_params(k_p, input_channels, emb_channels, num_head,
                         num_gene, num_celltype, num_nodes)

    fwd = jax.jit(functools.partial(
        gat_forward, heads=num_head, out_channels=2 * emb_channels,
        num_nodes=num_nodes, num_gene=num_gene))

    out_cell, out_gene = fwd(params, x, edge_index, batch, emb)
    out_cell, out_gene = jax.block_until_ready((out_cell, out_gene))

    assert out_cell.shape == (batchsize, num_celltype)
    assert out_gene.shape == (batchsize, num_gene)
    assert bool(jnp.all(jnp.isfinite(out_cell)))
    assert bool(jnp.all(jnp.isfinite(out_gene)))
    print("KERNEL_OK")
</pallas_src>

<mosaic_0001>
module attributes {stable_mosaic.version = 11 : i64} {
  func.func private @main(%arg0: i32) attributes {dimension_semantics = [#tpu.dimension_semantics<core_parallel>], iteration_bounds = array<i64: 2>, tpu.core_type = #tpu.core_type<sc_scalar_subcore>, window_params = []} {
    return
  }
}

module attributes {stable_mosaic.version = 11 : i64} {
  func.func private @main(%arg0: i32) attributes {dimension_semantics = [#tpu.dimension_semantics<core_parallel>], iteration_bounds = array<i64: 2>, tpu.core_type = #tpu.core_type<sc_scalar_subcore>, window_params = []} {
    return
  }
}

module attributes {stable_mosaic.version = 11 : i64} {
  func.func @_edge_logits_kernel(%arg0: i32, %arg1: memref<32x36xf32, #tpu.memory_space<vmem>>, %arg2: memref<32x36xf32, #tpu.memory_space<vmem>>, %arg3: memref<4x8xbf16, #tpu.memory_space<vmem>>, %arg4: memref<1x8xf32, #tpu.memory_space<vmem>>, %arg5: memref<8x32xbf16, #tpu.memory_space<vmem>>, %arg6: memref<32x2xbf16, #tpu.memory_space<vmem>>, %arg7: memref<32x2xf32, #tpu.memory_space<vmem>>) attributes {dimension_semantics = [#tpu.dimension_semantics<parallel>], iteration_bounds = array<i64: 1>, scalar_prefetch = 0 : i64, scratch_operands = 0 : i64, tpu.core_type = #tpu.core_type<tc>, window_params = [{transform_indices = @transform_0, window_bounds = array<i64: 32, 36>}, {transform_indices = @transform_1, window_bounds = array<i64: 32, 36>}, {pipeline_mode = #tpu.pipeline_mode<synchronous>, transform_indices = @transform_2, window_bounds = array<i64: 4, 8>}, {pipeline_mode = #tpu.pipeline_mode<synchronous>, transform_indices = @transform_3, window_bounds = array<i64: 1, 8>}, {pipeline_mode = #tpu.pipeline_mode<synchronous>, transform_indices = @transform_4, window_bounds = array<i64: 8, 32>}, {pipeline_mode = #tpu.pipeline_mode<synchronous>, transform_indices = @transform_5, window_bounds = array<i64: 32, 2>}, {transform_indices = @transform_6, window_bounds = array<i64: 32, 2>}]} {
    %c0 = arith.constant 0 : index
    %c0_0 = arith.constant 0 : index
    %0 = vector.load %arg1[%c0, %c0_0] : memref<32x36xf32, #tpu.memory_space<vmem>>, vector<32x36xf32>
    %c0_1 = arith.constant 0 : index
    %c0_2 = arith.constant 0 : index
    %1 = vector.load %arg2[%c0_1, %c0_2] : memref<32x36xf32, #tpu.memory_space<vmem>>, vector<32x36xf32>
    %2 = vector.extract_strided_slice %0 {offsets = [0, 0], sizes = [32, 4], strides = [1, 1]} : vector<32x36xf32> to vector<32x4xf32>
    %3 = vector.extract_strided_slice %0 {offsets = [0, 4], sizes = [32, 32], strides = [1, 1]} : vector<32x36xf32> to vector<32x32xf32>
    %4 = vector.extract_strided_slice %1 {offsets = [0, 0], sizes = [32, 4], strides = [1, 1]} : vector<32x36xf32> to vector<32x4xf32>
    %5 = vector.extract_strided_slice %1 {offsets = [0, 4], sizes = [32, 32], strides = [1, 1]} : vector<32x36xf32> to vector<32x32xf32>
    %6 = arith.mulf %2, %4 : vector<32x4xf32>
    %7 = arith.truncf %6 : vector<32x4xf32> to vector<32x4xbf16>
    %c0_3 = arith.constant 0 : index
    %c0_4 = arith.constant 0 : index
    %8 = vector.load %arg3[%c0_3, %c0_4] : memref<4x8xbf16, #tpu.memory_space<vmem>>, vector<4x8xbf16>
    %cst = arith.constant dense<0.000000e+00> : vector<32x8xf32>
    %9 = tpu.matmul %7, %8, %cst {dimension_numbers = #tpu.dot_dimension_numbers<[1], [0], [0], [1], [0, 0, 1, 1], [], []>} : vector<32x4xbf16>, vector<4x8xbf16>, vector<32x8xf32> -> vector<32x8xf32>
    %c0_5 = arith.constant 0 : index
    %c0_6 = arith.constant 0 : index
    %10 = vector.load %arg4[%c0_5, %c0_6] : memref<1x8xf32, #tpu.memory_space<vmem>>, vector<1x8xf32>
    %11 = vector.broadcast %10 : vector<1x8xf32> to vector<32x8xf32>
    %12 = arith.addf %9, %11 : vector<32x8xf32>
    %cst_7 = arith.constant 0.000000e+00 : f32
    %13 = vector.broadcast %cst_7 : f32 to vector<32x8xf32>
    %14 = arith.maximumf %12, %13 : vector<32x8xf32>
    %15 = arith.truncf %14 : vector<32x8xf32> to vector<32x8xbf16>
    %c0_8 = arith.constant 0 : index
    %c0_9 = arith.constant 0 : index
    %16 = vector.load %arg5[%c0_8, %c0_9] : memref<8x32xbf16, #tpu.memory_space<vmem>>, vector<8x32xbf16>
    %cst_10 = arith.constant dense<0.000000e+00> : vector<32x32xf32>
    %17 = tpu.matmul %15, %16, %cst_10 {dimension_numbers = #tpu.dot_dimension_numbers<[1], [0], [0], [1], [0, 0, 1, 1], [], []>} : vector<32x8xbf16>, vector<8x32xbf16>, vector<32x32xf32> -> vector<32x32xf32>
    %18 = arith.addf %5, %3 : vector<32x32xf32>
    %19 = arith.addf %18, %17 : vector<32x32xf32>
    %cst_11 = arith.constant 0.000000e+00 : f32
    %20 = vector.broadcast %cst_11 : f32 to vector<32x32xf32>
    %21 = arith.cmpf oge, %19, %20 : vector<32x32xf32>
    %cst_12 = arith.constant 2.000000e-01 : f32
    %22 = vector.broadcast %cst_12 : f32 to vector<32x32xf32>
    %23 = arith.mulf %22, %19 : vector<32x32xf32>
    %24 = arith.select %21, %19, %23 : vector<32x32xi1>, vector<32x32xf32>
    %25 = arith.truncf %24 : vector<32x32xf32> to vector<32x32xbf16>
    %c0_13 = arith.constant 0 : index
    %c0_14 = arith.constant 0 : index
    %26 = vector.load %arg6[%c0_13, %c0_14] : memref<32x2xbf16, #tpu.memory_space<vmem>>, vector<32x2xbf16>
    %cst_15 = arith.constant dense<0.000000e+00> : vector<32x2xf32>
    %27 = tpu.matmul %25, %26, %cst_15 {dimension_numbers = #tpu.dot_dimension_numbers<[1], [0], [0], [1], [0, 0, 1, 1], [], []>} : vector<32x32xbf16>, vector<32x2xbf16>, vector<32x2xf32> -> vector<32x2xf32>
    %c0_16 = arith.constant 0 : index
    %c0_17 = arith.constant 0 : index
    %28 = vector.load %arg7[%c0_16, %c0_17] : memref<32x2xf32, #tpu.memory_space<vmem>>, vector<32x2xf32>
    tpu.vector_store %arg7[%c0_16, %c0_17], %27 {strides = array<i32>} : memref<32x2xf32, #tpu.memory_space<vmem>>, vector<32x2xf32>,
    return
  }
  func.func @transform_0(%arg0: i32) -> (i32, i32) {
    %c0_i32 = arith.constant 0 : i32
    %c0_i32_0 = arith.constant 0 : i32
    return %arg0, %c0_i32 : i32, i32
  }
  func.func @transform_1(%arg0: i32) -> (i32, i32) {
    %c0_i32 = arith.constant 0 : i32
    %c0_i32_0 = arith.constant 0 : i32
    return %arg0, %c0_i32 : i32, i32
  }
  func.func @transform_2(%arg0: i32) -> (i32, i32) {
    %c0_i32 = arith.constant 0 : i32
    %c0_i32_0 = arith.constant 0 : i32
    %c0_i32_1 = arith.constant 0 : i32
    return %c0_i32, %c0_i32_0 : i32, i32
  }
  func.func @transform_3(%arg0: i32) -> (i32, i32) {
    %c0_i32 = arith.constant 0 : i32
    %c0_i32_0 = arith.constant 0 : i32
    %c0_i32_1 = arith.constant 0 : i32
    return %c0_i32, %c0_i32_0 : i32, i32
  }
  func.func @transform_4(%arg0: i32) -> (i32, i32) {
    %c0_i32 = arith.constant 0 : i32
    %c0_i32_0 = arith.constant 0 : i32
    %c0_i32_1 = arith.constant 0 : i32
    return %c0_i32, %c0_i32_0 : i32, i32
  }
  func.func @transform_5(%arg0: i32) -> (i32, i32) {
    %c0_i32 = arith.constant 0 : i32
    %c0_i32_0 = arith.constant 0 : i32
    %c0_i32_1 = arith.constant 0 : i32
    return %c0_i32, %c0_i32_0 : i32, i32
  }
  func.func @transform_6(%arg0: i32) -> (i32, i32) {
    %c0_i32 = arith.constant 0 : i32
    %c0_i32_0 = arith.constant 0 : i32
    return %arg0, %c0_i32 : i32, i32
  }
}

module attributes {stable_mosaic.version = 11 : i64} {
  func.func @_node_proj_kernel(%arg0: i32, %arg1: memref<16x4xf32, #tpu.memory_space<vmem>>, %arg2: memref<16x8xf32, #tpu.memory_space<vmem>>, %arg3: memref<4x16xbf16, #tpu.memory_space<vmem>>, %arg4: memref<8x16xbf16, #tpu.memory_space<vmem>>, %arg5: memref<1x16xf32, #tpu.memory_space<vmem>>, %arg6: memref<16x64xbf16, #tpu.memory_space<vmem>>, %arg7: memref<1x64xf32, #tpu.memory_space<vmem>>, %arg8: memref<16x36xf32, #tpu.memory_space<vmem>>, %arg9: memref<16x36xf32, #tpu.memory_space<vmem>>) attributes {dimension_semantics = [#tpu.dimension_semantics<parallel>], iteration_bounds = array<i64: 1>, scalar_prefetch = 0 : i64, scratch_operands = 0 : i64, tpu.core_type = #tpu.core_type<tc>, window_params = [{transform_indices = @transform_0, window_bounds = array<i64: 16, 4>}, {transform_indices = @transform_1, window_bounds = array<i64: 16, 8>}, {pipeline_mode = #tpu.pipeline_mode<synchronous>, transform_indices = @transform_2, window_bounds = array<i64: 4, 16>}, {pipeline_mode = #tpu.pipeline_mode<synchronous>, transform_indices = @transform_3, window_bounds = array<i64: 8, 16>}, {pipeline_mode = #tpu.pipeline_mode<synchronous>, transform_indices = @transform_4, window_bounds = array<i64: 1, 16>}, {pipeline_mode = #tpu.pipeline_mode<synchronous>, transform_indices = @transform_5, window_bounds = array<i64: 16, 64>}, {pipeline_mode = #tpu.pipeline_mode<synchronous>, transform_indices = @transform_6, window_bounds = array<i64: 1, 64>}, {transform_indices = @transform_7, window_bounds = array<i64: 16, 36>}, {transform_indices = @transform_8, window_bounds = array<i64: 16, 36>}]} {
    %c0 = arith.constant 0 : index
    %c0_0 = arith.constant 0 : index
    %0 = vector.load %arg1[%c0, %c0_0] : memref<16x4xf32, #tpu.memory_space<vmem>>, vector<16x4xf32>
    %1 = arith.truncf %0 : vector<16x4xf32> to vector<16x4xbf16>
    %c0_1 = arith.constant 0 : index
    %c0_2 = arith.constant 0 : index
    %2 = vector.load %arg3[%c0_1, %c0_2] : memref<4x16xbf16, #tpu.memory_space<vmem>>, vector<4x16xbf16>
    %cst = arith.constant dense<0.000000e+00> : vector<16x16xf32>
    %3 = tpu.matmul %1, %2, %cst {dimension_numbers = #tpu.dot_dimension_numbers<[1], [0], [0], [1], [0, 0, 1, 1], [], []>} : vector<16x4xbf16>, vector<4x16xbf16>, vector<16x16xf32> -> vector<16x16xf32>
    %c0_3 = arith.constant 0 : index
    %c0_4 = arith.constant 0 : index
    %4 = vector.load %arg2[%c0_3, %c0_4] : memref<16x8xf32, #tpu.memory_space<vmem>>, vector<16x8xf32>
    %5 = arith.truncf %4 : vector<16x8xf32> to vector<16x8xbf16>
    %c0_5 = arith.constant 0 : index
    %c0_6 = arith.constant 0 : index
    %6 = vector.load %arg4[%c0_5, %c0_6] : memref<8x16xbf16, #tpu.memory_space<vmem>>, vector<8x16xbf16>
    %cst_7 = arith.constant dense<0.000000e+00> : vector<16x16xf32>
    %7 = tpu.matmul %5, %6, %cst_7 {dimension_numbers = #tpu.dot_dimension_numbers<[1], [0], [0], [1], [0, 0, 1, 1], [], []>} : vector<16x8xbf16>, vector<8x16xbf16>, vector<16x16xf32> -> vector<16x16xf32>
    %8 = arith.addf %3, %7 : vector<16x16xf32>
    %c0_8 = arith.constant 0 : index
    %c0_9 = arith.constant 0 : index
    %9 = vector.load %arg5[%c0_8, %c0_9] : memref<1x16xf32, #tpu.memory_space<vmem>>, vector<1x16xf32>
    %10 = vector.broadcast %9 : vector<1x16xf32> to vector<16x16xf32>
    %11 = arith.addf %8, %10 : vector<16x16xf32>
    %cst_10 = arith.constant 0.000000e+00 : f32
    %12 = vector.broadcast %cst_10 : f32 to vector<16x16xf32>
    %13 = arith.maximumf %11, %12 : vector<16x16xf32>
    %14 = arith.truncf %13 : vector<16x16xf32> to vector<16x16xbf16>
    %c0_11 = arith.constant 0 : index
    %c0_12 = arith.constant 0 : index
    %15 = vector.load %arg6[%c0_11, %c0_12] : memref<16x64xbf16, #tpu.memory_space<vmem>>, vector<16x64xbf16>
    %cst_13 = arith.constant dense<0.000000e+00> : vector<16x64xf32>
    %16 = tpu.matmul %14, %15, %cst_13 {dimension_numbers = #tpu.dot_dimension_numbers<[1], [0], [0], [1], [0, 0, 1, 1], [], []>} : vector<16x16xbf16>, vector<16x64xbf16>, vector<16x64xf32> -> vector<16x64xf32>
    %c0_14 = arith.constant 0 : index
    %c0_15 = arith.constant 0 : index
    %17 = vector.load %arg7[%c0_14, %c0_15] : memref<1x64xf32, #tpu.memory_space<vmem>>, vector<1x64xf32>
    %18 = vector.broadcast %17 : vector<1x64xf32> to vector<16x64xf32>
    %19 = arith.addf %16, %18 : vector<16x64xf32>
    %20 = vector.extract_strided_slice %19 {offsets = [0, 0], sizes = [16, 32], strides = [1, 1]} : vector<16x64xf32> to vector<16x32xf32>
    %21 = tpu.concatenate %0, %20 in 1 : vector<16x4xf32>, vector<16x32xf32> -> vector<16x36xf32>
    %c0_16 = arith.constant 0 : index
    %c0_17 = arith.constant 0 : index
    %22 = vector.load %arg8[%c0_16, %c0_17] : memref<16x36xf32, #tpu.memory_space<vmem>>, vector<16x36xf32>
    tpu.vector_store %arg8[%c0_16, %c0_17], %21 {strides = array<i32>} : memref<16x36xf32, #tpu.memory_space<vmem>>, vector<16x36xf32>,
    %23 = vector.extract_strided_slice %19 {offsets = [0, 32], sizes = [16, 32], strides = [1, 1]} : vector<16x64xf32> to vector<16x32xf32>
    %24 = tpu.concatenate %0, %23 in 1 : vector<16x4xf32>, vector<16x32xf32> -> vector<16x36xf32>
    %c0_18 = arith.constant 0 : index
    %c0_19 = arith.constant 0 : index
    %25 = vector.load %arg9[%c0_18, %c0_19] : memref<16x36xf32, #tpu.memory_space<vmem>>, vector<16x36xf32>
    tpu.vector_store %arg9[%c0_18, %c0_19], %24 {strides = array<i32>} : memref<16x36xf32, #tpu.memory_space<vmem>>, vector<16x36xf32>,
    return
  }
  func.func @transform_0(%arg0: i32) -> (i32, i32) {
    %c0_i32 = arith.constant 0 : i32
    %c0_i32_0 = arith.constant 0 : i32
    return %arg0, %c0_i32 : i32, i32
  }
  func.func @transform_1(%arg0: i32) -> (i32, i32) {
    %c0_i32 = arith.constant 0 : i32
    %c0_i32_0 = arith.constant 0 : i32
    return %arg0, %c0_i32 : i32, i32
  }
  func.func @transform_2(%arg0: i32) -> (i32, i32) {
    %c0_i32 = arith.constant 0 : i32
    %c0_i32_0 = arith.constant 0 : i32
    %c0_i32_1 = arith.constant 0 : i32
    return %c0_i32, %c0_i32_0 : i32, i32
  }
  func.func @transform_3(%arg0: i32) -> (i32, i32) {
    %c0_i32 = arith.constant 0 : i32
    %c0_i32_0 = arith.constant 0 : i32
    %c0_i32_1 = arith.constant 0 : i32
    return %c0_i32, %c0_i32_0 : i32, i32
  }
  func.func @transform_4(%arg0: i32) -> (i32, i32) {
    %c0_i32 = arith.constant 0 : i32
    %c0_i32_0 = arith.constant 0 : i32
    %c0_i32_1 = arith.constant 0 : i32
    return %c0_i32, %c0_i32_0 : i32, i32
  }
  func.func @transform_5(%arg0: i32) -> (i32, i32) {
    %c0_i32 = arith.constant 0 : i32
    %c0_i32_0 = arith.constant 0 : i32
    %c0_i32_1 = arith.constant 0 : i32
    return %c0_i32, %c0_i32_0 : i32, i32
  }
  func.func @transform_6(%arg0: i32) -> (i32, i32) {
    %c0_i32 = arith.constant 0 : i32
    %c0_i32_0 = arith.constant 0 : i32
    %c0_i32_1 = arith.constant 0 : i32
    return %c0_i32, %c0_i32_0 : i32, i32
  }
  func.func @transform_7(%arg0: i32) -> (i32, i32) {
    %c0_i32 = arith.constant 0 : i32
    %c0_i32_0 = arith.constant 0 : i32
    return %arg0, %c0_i32 : i32, i32
  }
  func.func @transform_8(%arg0: i32) -> (i32, i32) {
    %c0_i32 = arith.constant 0 : i32
    %c0_i32_0 = arith.constant 0 : i32
    return %arg0, %c0_i32 : i32, i32
  }
}

module attributes {stable_mosaic.version = 11 : i64} {
  func.func @_edge_scalar_kernel(%arg0: i32, %arg1: memref<32x36xf32, #tpu.memory_space<vmem>>, %arg2: memref<32x2xf32, #tpu.memory_space<vmem>>, %arg3: memref<32x2xf32, #tpu.memory_space<vmem>>, %arg4: memref<32x2xbf16, #tpu.memory_space<vmem>>, %arg5: memref<32x1xf32, #tpu.memory_space<vmem>>) attributes {dimension_semantics = [#tpu.dimension_semantics<parallel>], iteration_bounds = array<i64: 1>, scalar_prefetch = 0 : i64, scratch_operands = 0 : i64, tpu.core_type = #tpu.core_type<tc>, window_params = [{transform_indices = @transform_0, window_bounds = array<i64: 32, 36>}, {transform_indices = @transform_1, window_bounds = array<i64: 32, 2>}, {transform_indices = @transform_2, window_bounds = array<i64: 32, 2>}, {pipeline_mode = #tpu.pipeline_mode<synchronous>, transform_indices = @transform_3, window_bounds = array<i64: 32, 2>}, {transform_indices = @transform_4, window_bounds = array<i64: 32, 1>}]} {
    %c0 = arith.constant 0 : index
    %c0_0 = arith.constant 0 : index
    %0 = vector.load %arg1[%c0, %c0_0] : memref<32x36xf32, #tpu.memory_space<vmem>>, vector<32x36xf32>
    %1 = vector.extract_strided_slice %0 {offsets = [0, 4], sizes = [32, 32], strides = [1, 1]} : vector<32x36xf32> to vector<32x32xf32>
    %2 = arith.truncf %1 : vector<32x32xf32> to vector<32x32xbf16>
    %c0_1 = arith.constant 0 : index
    %c0_2 = arith.constant 0 : index
    %3 = vector.load %arg4[%c0_1, %c0_2] : memref<32x2xbf16, #tpu.memory_space<vmem>>, vector<32x2xbf16>
    %cst = arith.constant dense<0.000000e+00> : vector<32x2xf32>
    %4 = tpu.matmul %2, %3, %cst {dimension_numbers = #tpu.dot_dimension_numbers<[1], [0], [0], [1], [0, 0, 1, 1], [], []>} : vector<32x32xbf16>, vector<32x2xbf16>, vector<32x2xf32> -> vector<32x2xf32>
    %c0_3 = arith.constant 0 : index
    %c0_4 = arith.constant 0 : index
    %5 = vector.load %arg3[%c0_3, %c0_4] : memref<32x2xf32, #tpu.memory_space<vmem>>, vector<32x2xf32>
    %cst_5 = arith.constant 1.000000e-16 : f32
    %6 = vector.broadcast %cst_5 : f32 to vector<32x2xf32>
    %7 = arith.addf %5, %6 : vector<32x2xf32>
    %8 = tpu.reciprocal %7 {approx = true} : vector<32x2xf32> -> vector<32x2xf32>
    %c0_6 = arith.constant 0 : index
    %c0_7 = arith.constant 0 : index
    %9 = vector.load %arg2[%c0_6, %c0_7] : memref<32x2xf32, #tpu.memory_space<vmem>>, vector<32x2xf32>
    %10 = arith.mulf %9, %8 : vector<32x2xf32>
    %11 = arith.mulf %10, %4 : vector<32x2xf32>
    %cst_8 = arith.constant dense<0.000000e+00> : vector<32xf32>
    %12 = vector.multi_reduction <add>, %11, %cst_8 [1] : vector<32x2xf32> to vector<32xf32>
    %13 = vector.shape_cast %12 : vector<32xf32> to vector<32x1xf32>
    %c0_9 = arith.constant 0 : index
    %c0_10 = arith.constant 0 : index
    %14 = vector.load %arg5[%c0_9, %c0_10] : memref<32x1xf32, #tpu.memory_space<vmem>>, vector<32x1xf32>
    tpu.vector_store %arg5[%c0_9, %c0_10], %13 {strides = array<i32>} : memref<32x1xf32, #tpu.memory_space<vmem>>, vector<32x1xf32>,
    return
  }
  func.func @transform_0(%arg0: i32) -> (i32, i32) {
    %c0_i32 = arith.constant 0 : i32
    %c0_i32_0 = arith.constant 0 : i32
    return %arg0, %c0_i32 : i32, i32
  }
  func.func @transform_1(%arg0: i32) -> (i32, i32) {
    %c0_i32 = arith.constant 0 : i32
    %c0_i32_0 = arith.constant 0 : i32
    return %arg0, %c0_i32 : i32, i32
  }
  func.func @transform_2(%arg0: i32) -> (i32, i32) {
    %c0_i32 = arith.constant 0 : i32
    %c0_i32_0 = arith.constant 0 : i32
    return %arg0, %c0_i32 : i32, i32
  }
  func.func @transform_3(%arg0: i32) -> (i32, i32) {
    %c0_i32 = arith.constant 0 : i32
    %c0_i32_0 = arith.constant 0 : i32
    %c0_i32_1 = arith.constant 0 : i32
    return %c0_i32, %c0_i32_0 : i32, i32
  }
  func.func @transform_4(%arg0: i32) -> (i32, i32) {
    %c0_i32 = arith.constant 0 : i32
    %c0_i32_0 = arith.constant 0 : i32
    return %arg0, %c0_i32 : i32, i32
  }
}

module attributes {stable_mosaic.version = 11 : i64} {
  func.func @_output_head_kernel(%arg0: i32, %arg1: memref<2x4xf32, #tpu.memory_space<vmem>>, %arg2: memref<1x4xf32, #tpu.memory_space<vmem>>, %arg3: memref<1x4xf32, #tpu.memory_space<vmem>>, %arg4: memref<4x4xbf16, #tpu.memory_space<vmem>>, %arg5: memref<1x4xf32, #tpu.memory_space<vmem>>, %arg6: memref<4x3xbf16, #tpu.memory_space<vmem>>, %arg7: memref<1x3xf32, #tpu.memory_space<vmem>>, %arg8: memref<2x3xf32, #tpu.memory_space<vmem>>, %arg9: memref<2x4xf32, #tpu.memory_space<vmem>>) attributes {dimension_semantics = [#tpu.dimension_semantics<parallel>], iteration_bounds = array<i64: 1>, scalar_prefetch = 0 : i64, scratch_operands = 0 : i64, tpu.core_type = #tpu.core_type<tc>, window_params = [{transform_indices = @transform_0, window_bounds = array<i64: 2, 4>}, {pipeline_mode = #tpu.pipeline_mode<synchronous>, transform_indices = @transform_1, window_bounds = array<i64: 1, 4>}, {pipeline_mode = #tpu.pipeline_mode<synchronous>, transform_indices = @transform_2, window_bounds = array<i64: 1, 4>}, {pipeline_mode = #tpu.pipeline_mode<synchronous>, transform_indices = @transform_3, window_bounds = array<i64: 4, 4>}, {pipeline_mode = #tpu.pipeline_mode<synchronous>, transform_indices = @transform_4, window_bounds = array<i64: 1, 4>}, {pipeline_mode = #tpu.pipeline_mode<synchronous>, transform_indices = @transform_5, window_bounds = array<i64: 4, 3>}, {pipeline_mode = #tpu.pipeline_mode<synchronous>, transform_indices = @transform_6, window_bounds = array<i64: 1, 3>}, {transform_indices = @transform_7, window_bounds = array<i64: 2, 3>}, {transform_indices = @transform_8, window_bounds = array<i64: 2, 4>}]} {
    %c0 = arith.constant 0 : index
    %c0_0 = arith.constant 0 : index
    %0 = vector.load %arg1[%c0, %c0_0] : memref<2x4xf32, #tpu.memory_space<vmem>>, vector<2x4xf32>
    %cst = arith.constant dense<0.000000e+00> : vector<2xf32>
    %1 = vector.multi_reduction <add>, %0, %cst [1] : vector<2x4xf32> to vector<2xf32>
    %2 = vector.shape_cast %1 : vector<2xf32> to vector<2x1xf32>
    %cst_1 = arith.constant 4.000000e+00 : f32
    %3 = vector.broadcast %cst_1 : f32 to vector<2x1xf32>
    %4 = arith.divf %2, %3 : vector<2x1xf32>
    %5 = vector.broadcast %4 : vector<2x1xf32> to vector<2x4xf32>
    %6 = arith.subf %0, %5 : vector<2x4xf32>
    %7 = arith.mulf %6, %6 : vector<2x4xf32>
    %cst_2 = arith.constant dense<0.000000e+00> : vector<2xf32>
    %8 = vector.multi_reduction <add>, %7, %cst_2 [1] : vector<2x4xf32> to vector<2xf32>
    %9 = vector.shape_cast %8 : vector<2xf32> to vector<2x1xf32>
    %cst_3 = arith.constant 4.000000e+00 : f32
    %10 = vector.broadcast %cst_3 : f32 to vector<2x1xf32>
    %11 = arith.divf %9, %10 : vector<2x1xf32>
    %12 = vector.broadcast %4 : vector<2x1xf32> to vector<2x4xf32>
    %13 = arith.subf %0, %12 : vector<2x4xf32>
    %cst_4 = arith.constant 9.99999974E-6 : f32
    %14 = vector.broadcast %cst_4 : f32 to vector<2x1xf32>
    %15 = arith.addf %11, %14 : vector<2x1xf32>
    %16 = math.rsqrt %15 : vector<2x1xf32>
    %17 = vector.broadcast %16 : vector<2x1xf32> to vector<2x4xf32>
    %18 = arith.mulf %13, %17 : vector<2x4xf32>
    %c0_5 = arith.constant 0 : index
    %c0_6 = arith.constant 0 : index
    %19 = vector.load %arg2[%c0_5, %c0_6] : memref<1x4xf32, #tpu.memory_space<vmem>>, vector<1x4xf32>
    %20 = vector.broadcast %19 : vector<1x4xf32> to vector<2x4xf32>
    %21 = arith.mulf %18, %20 : vector<2x4xf32>
    %c0_7 = arith.constant 0 : index
    %c0_8 = arith.constant 0 : index
    %22 = vector.load %arg3[%c0_7, %c0_8] : memref<1x4xf32, #tpu.memory_space<vmem>>, vector<1x4xf32>
    %23 = vector.broadcast %22 : vector<1x4xf32> to vector<2x4xf32>
    %24 = arith.addf %21, %23 : vector<2x4xf32>
    %25 = arith.truncf %24 : vector<2x4xf32> to vector<2x4xbf16>
    %c0_9 = arith.constant 0 : index
    %c0_10 = arith.constant 0 : index
    %26 = vector.load %arg4[%c0_9, %c0_10] : memref<4x4xbf16, #tpu.memory_space<vmem>>, vector<4x4xbf16>
    %cst_11 = arith.constant dense<0.000000e+00> : vector<2x4xf32>
    %27 = tpu.matmul %25, %26, %cst_11 {dimension_numbers = #tpu.dot_dimension_numbers<[1], [0], [0], [1], [0, 0, 1, 1], [], []>} : vector<2x4xbf16>, vector<4x4xbf16>, vector<2x4xf32> -> vector<2x4xf32>
    %c0_12 = arith.constant 0 : index
    %c0_13 = arith.constant 0 : index
    %28 = vector.load %arg5[%c0_12, %c0_13] : memref<1x4xf32, #tpu.memory_space<vmem>>, vector<1x4xf32>
    %29 = vector.broadcast %28 : vector<1x4xf32> to vector<2x4xf32>
    %30 = arith.addf %27, %29 : vector<2x4xf32>
    %cst_14 = arith.constant 0.000000e+00 : f32
    %31 = vector.broadcast %cst_14 : f32 to vector<2x4xf32>
    %32 = arith.maximumf %30, %31 : vector<2x4xf32>
    %33 = arith.truncf %32 : vector<2x4xf32> to vector<2x4xbf16>
    %c0_15 = arith.constant 0 : index
    %c0_16 = arith.constant 0 : index
    %34 = vector.load %arg6[%c0_15, %c0_16] : memref<4x3xbf16, #tpu.memory_space<vmem>>, vector<4x3xbf16>
    %cst_17 = arith.constant dense<0.000000e+00> : vector<2x3xf32>
    %35 = tpu.matmul %33, %34, %cst_17 {dimension_numbers = #tpu.dot_dimension_numbers<[1], [0], [0], [1], [0, 0, 1, 1], [], []>} : vector<2x4xbf16>, vector<4x3xbf16>, vector<2x3xf32> -> vector<2x3xf32>
    %c0_18 = arith.constant 0 : index
    %c0_19 = arith.constant 0 : index
    %36 = vector.load %arg7[%c0_18, %c0_19] : memref<1x3xf32, #tpu.memory_space<vmem>>, vector<1x3xf32>
    %37 = vector.broadcast %36 : vector<1x3xf32> to vector<2x3xf32>
    %38 = arith.addf %35, %37 : vector<2x3xf32>
    %cst_20 = arith.constant dense<0xFF800000> : vector<2xf32>
    %39 = vector.multi_reduction <maximumf>, %38, %cst_20 [1] : vector<2x3xf32> to vector<2xf32>
    %40 = vector.shape_cast %39 : vector<2xf32> to vector<2x1xf32>
    %41 = vector.broadcast %40 : vector<2x1xf32> to vector<2x3xf32>
    %42 = arith.subf %38, %41 : vector<2x3xf32>
    %43 = math.exp %42 : vector<2x3xf32>
    %cst_21 = arith.constant dense<0.000000e+00> : vector<2xf32>
    %44 = vector.multi_reduction <add>, %43, %cst_21 [1] : vector<2x3xf32> to vector<2xf32>
    %45 = vector.shape_cast %44 : vector<2xf32> to vector<2x1xf32>
    %46 = math.log %45 : vector<2x1xf32>
    %47 = arith.addf %40, %46 : vector<2x1xf32>
    %48 = vector.broadcast %47 : vector<2x1xf32> to vector<2x3xf32>
    %49 = arith.subf %38, %48 : vector<2x3xf32>
    %c0_22 = arith.constant 0 : index
    %c0_23 = arith.constant 0 : index
    %50 = vector.load %arg8[%c0_22, %c0_23] : memref<2x3xf32, #tpu.memory_space<vmem>>, vector<2x3xf32>
    tpu.vector_store %arg8[%c0_22, %c0_23], %49 {strides = array<i32>} : memref<2x3xf32, #tpu.memory_space<vmem>>, vector<2x3xf32>,
    %cst_24 = arith.constant dense<0xFF800000> : vector<2xf32>
    %51 = vector.multi_reduction <maximumf>, %24, %cst_24 [1] : vector<2x4xf32> to vector<2xf32>
    %52 = vector.shape_cast %51 : vector<2xf32> to vector<2x1xf32>
    %53 = vector.broadcast %52 : vector<2x1xf32> to vector<2x4xf32>
    %54 = arith.subf %24, %53 : vector<2x4xf32>
    %55 = math.exp %54 : vector<2x4xf32>
    %cst_25 = arith.constant dense<0.000000e+00> : vector<2xf32>
    %56 = vector.multi_reduction <add>, %55, %cst_25 [1] : vector<2x4xf32> to vector<2xf32>
    %57 = vector.shape_cast %56 : vector<2xf32> to vector<2x1xf32>
    %58 = math.log %57 : vector<2x1xf32>
    %59 = arith.addf %52, %58 : vector<2x1xf32>
    %60 = vector.broadcast %59 : vector<2x1xf32> to vector<2x4xf32>
    %61 = arith.subf %24, %60 : vector<2x4xf32>
    %c0_26 = arith.constant 0 : index
    %c0_27 = arith.constant 0 : index
    %62 = vector.load %arg9[%c0_26, %c0_27] : memref<2x4xf32, #tpu.memory_space<vmem>>, vector<2x4xf32>
    tpu.vector_store %arg9[%c0_26, %c0_27], %61 {strides = array<i32>} : memref<2x4xf32, #tpu.memory_space<vmem>>, vector<2x4xf32>,
    return
  }
  func.func @transform_0(%arg0: i32) -> (i32, i32) {
    %c0_i32 = arith.constant 0 : i32
    %c0_i32_0 = arith.constant 0 : i32
    return %arg0, %c0_i32 : i32, i32
  }
  func.func @transform_1(%arg0: i32) -> (i32, i32) {
    %c0_i32 = arith.constant 0 : i32
    %c0_i32_0 = arith.constant 0 : i32
    %c0_i32_1 = arith.constant 0 : i32
    return %c0_i32, %c0_i32_0 : i32, i32
  }
  func.func @transform_2(%arg0: i32) -> (i32, i32) {
    %c0_i32 = arith.constant 0 : i32
    %c0_i32_0 = arith.constant 0 : i32
    %c0_i32_1 = arith.constant 0 : i32
    return %c0_i32, %c0_i32_0 : i32, i32
  }
  func.func @transform_3(%arg0: i32) -> (i32, i32) {
    %c0_i32 = arith.constant 0 : i32
    %c0_i32_0 = arith.constant 0 : i32
    %c0_i32_1 = arith.constant 0 : i32
    return %c0_i32, %c0_i32_0 : i32, i32
  }
  func.func @transform_4(%arg0: i32) -> (i32, i32) {
    %c0_i32 = arith.constant 0 : i32
    %c0_i32_0 = arith.constant 0 : i32
    %c0_i32_1 = arith.constant 0 : i32
    return %c0_i32, %c0_i32_0 : i32, i32
  }
  func.func @transform_5(%arg0: i32) -> (i32, i32) {
    %c0_i32 = arith.constant 0 : i32
    %c0_i32_0 = arith.constant 0 : i32
    %c0_i32_1 = arith.constant 0 : i32
    return %c0_i32, %c0_i32_0 : i32, i32
  }
  func.func @transform_6(%arg0: i32) -> (i32, i32) {
    %c0_i32 = arith.constant 0 : i32
    %c0_i32_0 = arith.constant 0 : i32
    %c0_i32_1 = arith.constant 0 : i32
    return %c0_i32, %c0_i32_0 : i32, i32
  }
  func.func @transform_7(%arg0: i32) -> (i32, i32) {
    %c0_i32 = arith.constant 0 : i32
    %c0_i32_0 = arith.constant 0 : i32
    return %arg0, %c0_i32 : i32, i32
  }
  func.func @transform_8(%arg0: i32) -> (i32, i32) {
    %c0_i32 = arith.constant 0 : i32
    %c0_i32_0 = arith.constant 0 : i32
    return %arg0, %c0_i32 : i32, i32
  }
}

</mosaic_0001>

<bundles_post_ra>
// kernel: mul.9
= control target key start
LH: loop header
LB: loop body
LE: loop exit
PB: predicated region body
PF: predicated region fallthrough
CT: control target
= control target key end

     0   :  { %vm7_vm0 = vcmask 130048   ;;  %vm13_vm1 = vcmask 261248   ;;  %v26_v5 = vmov 0.0   ;;  %s43_s0 = inlined_call_operand.vmem [shape: f32[2,16], index: 0, kind: input, shape index: {}]   ;;  %s44_s1 = inlined_call_operand.vmem [shape: bf16[32], index: 1, kind: output, shape index: {}]  }
   0x1   :  { %v4_v0 = vld [vmem:[%s43_s0] sm:$0x3]  ;;  %s25_s0 = smov 16  }
   0x2   :  { %5 = vst [vmem:[#allocation1] sm:$0x3] %v4_v0 }
   0x9   :  { %v10_v1 = vld [vmem:[#allocation1 + $0x1] sm:$0x1]   ;;  %v6_v2 = vld [vmem:[#allocation1] sm:$0x1]  }
   0xa   :  { %11 = vrot.lane.b32.xlu0 %v10_v1, %s25_s0  ;;  %8 = vst.msk [vmem:[#allocation0] sm:$0x1] %vm7_vm0, %v6_v2  }
  0x7c   :  { %v12_v3 = vpop.permute.xlu0 %11  }
  0x7d   :  { %14 = vst.msk [vmem:[#allocation0] sm:$0x1] %vm13_vm1, %v12_v3  }
  0x84   :  { %v19_v4 = vld [vmem:[#allocation0] sm:$0x3] }
  0x85   :  { %v20_v6 = vpack.c.bf16 %v26_v5, %v19_v4 }
  0x87   :  { %22 = vst [vmem:[%s44_s1] sm:$0x1] %v20_v6 }

// kernel: eq.8
= control target key start
LH: loop header
LB: loop body
LE: loop exit
PB: predicated region body
PF: predicated region fallthrough
CT: control target
= control target key end

     0   :  { %vm7_vm0 = vcmask 130048   ;;  %vm13_vm1 = vcmask 261248   ;;  %s39_s0 = inlined_call_operand.vmem [shape: s32[2,16], index: 0, kind: input, shape index: {}]   ;;  %s40_s1 = inlined_call_operand.vmem [shape: s32[32], index: 1, kind: output, shape index: {}]  }
   0x1   :  { %v4_v0 = vld [vmem:[%s39_s0] sm:$0x3]  ;;  %s22_s0 = smov 16  }
   0x2   :  { %5 = vst [vmem:[#allocation1] sm:$0x3] %v4_v0 }
   0x9   :  { %v10_v1 = vld [vmem:[#allocation1 + $0x1] sm:$0x1]   ;;  %v6_v2 = vld [vmem:[#allocation1] sm:$0x1]  }
   0xa   :  { %11 = vrot.lane.b32.xlu0 %v10_v1, %s22_s0  ;;  %8 = vst.msk [vmem:[#allocation0] sm:$0x1] %vm7_vm0, %v6_v2  }
  0x7c   :  { %v12_v3 = vpop.permute.xlu0 %11  }
  0x7d   :  { %14 = vst.msk [vmem:[#allocation0] sm:$0x1] %vm13_vm1, %v12_v3  }
  0x84   :  { %v18_v4 = vld [vmem:[#allocation0] sm:$0x1] }
  0x85   :  { %20 = vst [vmem:[%s40_s1] sm:$0x1] %v18_v4 }

// kernel: gat_forward.5
= control target key start
LH: loop header
LB: loop body
LE: loop exit
PB: predicated region body
PF: predicated region fallthrough
CT: control target
= control target key end

     0   :  { %vm53_vm0 = vcmask 1041408   ;;  %vm46_vm1 = vcmask 31744   ;;  %vm120_vm2 = vcmask 1043456   ;;  %vm113_vm3 = vcmask 64512   ;;  %s439_s2 = inlined_call_operand.vmem [shape: bf16[4,8], index: 2, kind: input, shape index: {}]   ;;  %s440_s0 = inlined_call_operand.vmem [shape: f32[32,36], index: 0, kind: input, shape index: {}]   ;;  %s441_s1 = inlined_call_operand.vmem [shape: f32[32,36], index: 1, kind: input, shape index: {}]   ;;  %s442_s4 = inlined_call_operand.vmem [shape: bf16[8,32], index: 4, kind: input, shape index: {}]   ;;  %s443_s3 = inlined_call_operand.vmem [shape: f32[1,8], index: 3, kind: input, shape index: {}]   ;;  %s444_s5 = inlined_call_operand.vmem [shape: bf16[32,2], index: 5, kind: input, shape index: {}]   ;;  %s445_s6 = inlined_call_operand.vmem [shape: f32[32,2], index: 6, kind: output, shape index: {}]  }
   0x1   :  { %v38_v0 = vld [vmem:[%s439_s2] sm:$0x3]  ;;  %v389_v2 = vld [vmem:[%s440_s0 + $0x8] sm:$0xff]  ;;  %v26_v6 = vld [vmem:[%s440_s0 + $0x10] sm:$0xff]  ;;  %vm233_vm8 = vcmask 261120   ;;  %vm289_vm9 = vcmask 15360  }
   0x2   :  { %v24_v1 = vld [vmem:[%s440_s0] sm:$0xff]  ;;  %337 = vmatprep.subr.msk.bf16.mxu0 %vm53_vm0, %v38_v0  ;;  %v55_v3 = vsel %vm53_vm0, %v38_v0, 0  ;;  %v397_v5 = vld [vmem:[%s441_s1 + $0x8] sm:$0xff]  ;;  %v27_v9 = vld [vmem:[%s440_s0 + $0x18] sm:$0xff] }
   0x3   :  { %v28_v4 = vld [vmem:[%s441_s1] sm:$0xff]  ;;  %318 = vmatpush3.bf16.msra.mxu0 %v55_v3  ;;  %v33_v8 = vmul.f32 %v397_v5, %v389_v2  ;;  %v30_v10 = vld [vmem:[%s441_s1 + $0x10] sm:$0xff]  ;;  %v31_v11 = vld [vmem:[%s441_s1 + $0x18] sm:$0xff]  ;;  %s343_s1 = smov 4   ;;  %v174_v46 = vadd.f32 %v397_v5, %v389_v2 }
   0x4   :  { %v32_v7 = vmul.f32 %v28_v4, %v24_v1  ;;  %v34_v12 = vmul.f32 %v30_v10, %v26_v6  ;;  %v35_v13 = vmul.f32 %v31_v11, %v27_v9  ;;  %v112_v16 = vld [vmem:[%s442_s4] sm:$0xf]  ;;  %v342_v37 = vld [vmem:[%s444_s5 + $0x8] sm:$0xff]   ;;  %v175_v39 = vadd.f32 %v30_v10, %v26_v6 }
   0x5   :  { %338 = vmatprep.subr.msk.bf16.mxu1 %vm120_vm2, %v112_v16  ;;  %v122_v17 = vsel %vm120_vm2, %v112_v16, 0  ;;  %v298_v18 = vld [vmem:[%s443_s3] ss:$0 sm:$0xff]  ;;  %v173_v40 = vadd.f32 %v28_v4, %v24_v1  ;;  %v176_v44 = vadd.f32 %v31_v11, %v27_v9 }
   0x6   :  { %v36_v14 = vpack.c.bf16 %v33_v8, %v32_v7  ;;  %v37_v15 = vpack.c.bf16 %v35_v13, %v34_v12  ;;  %324 = vmatpush3.bf16.msra.mxu1 %v122_v17  ;;  %v341_v35 = vld [vmem:[%s444_s5] sm:$0xff]   ;;  %s344_s5 = smov 124  }
   0x7   :  { %329 = vmatprep.subr.bf16.mxu0 %v341_v35 }
   0x8   :  { %319 = vmatprep.mubr.msk.bf16.mxu0 %vm46_vm1, %v36_v14 }
   0x9   :  { %320 = vmatmul.mubr.msk.bf16.vlgmr.msra.gmra.mrb[0].mxu0 %vm46_vm1, %v37_v15 }
   0xa   :  { %330 = vmatpush3.bf16.msra.mxu0 %v341_v35 }
   0xb   :  { %331 = vmatprep.subr.bf16.mxu0 %v342_v37 }
   0xe   :  { %332 = vmatpush3.bf16.msra.mxu0 %v342_v37 }
  0xdc   :  { %v321_v19 = vpop.f32.mrb[0].mxu0 }
  0xdd   :  { %v100_v20 = vadd.f32 %v321_v19, %v298_v18  ;;  %v91_v21 = vpop.f32.mrb[1].mxu0 }
  0xde   :  { %v92_v22 = vadd.f32 %v298_v18, %v91_v21  ;;  %v322_v23 = vpop.f32.mrb[2].mxu0 }
  0xdf   :  { %v103_v24 = vadd.f32 %v322_v23, %v298_v18  ;;  %v94_v25 = vpop.f32.mrb[3].mxu0  ;;  %v108_v27 = vmax.f32 %v100_v20, 0.0 }
  0xe0   :  { %v95_v26 = vadd.f32 %v298_v18, %v94_v25  ;;  %v106_v29 = vmax.f32 %v92_v22, 0.0 }
  0xe1   :  { %v109_v28 = vmax.f32 %v103_v24, 0.0 }
  0xe2   :  { %v107_v30 = vmax.f32 %v95_v26, 0.0 }
  0xe3   :  { %v111_v31 = vpack.c.bf16 %v109_v28, %v108_v27 }
  0xe4   :  { %v110_v32 = vpack.c.bf16 %v107_v30, %v106_v29 }
  0xe6   :  { %325 = vmatprep.mubr.msk.bf16.mxu1 %vm113_vm3, %v110_v32 }
  0xe7   :  { %326 = vmatmul.mubr.msk.bf16.vlgmr.msra.gmra.mrb[0].mxu1 %vm113_vm3, %v111_v31 }
 0x1ba   :  { %v327_v33 = vpop.f32.mrb[0].mxu1 }
 0x1bb   :  { %185 = vrot.lane.b32.xlu1 %v327_v33, %s343_s1  ;;  %v158_v34 = vpop.f32.mrb[1].mxu1 }
 0x1bc   :  { %181 = vrot.lane.b32.xlu0 %v158_v34, %s343_s1  ;;  %v328_v36 = vpop.f32.mrb[2].mxu1 }
 0x1bd   :  { %v161_v38 = vpop.f32.mrb[3].mxu1 }
 0x1bf   :  { %187 = vrot.lane.b32.xlu1 %v328_v36, %s343_s1 }
 0x1c0   :  { %183 = vrot.lane.b32.xlu0 %v161_v38, %s343_s1 }
 0x22d   :  { %v186_v41 = vpop.permute.xlu1 %185 }
 0x22e   :  { %v195_v42 = vadd.f32 %v186_v41, %v175_v39  ;;  %v182_v43 = vpop.permute.xlu0 %181 }
 0x22f   :  { %v193_v45 = vadd.f32 %v182_v43, %v173_v40 }
 0x230   :  { %v203_v48 = vmul.f32 0.2, %v195_v42  ;;  %vm199_vm4 = vcmp.ge.f32.partialorder %v195_v42, 0.0 }
 0x231   :  { %v188_v47 = vpop.permute.xlu1 %187  ;;  %v201_v51 = vmul.f32 0.2, %v193_v45  ;;  %vm197_vm5 = vcmp.ge.f32.partialorder %v193_v45, 0.0 }
 0x232   :  { %v196_v49 = vadd.f32 %v188_v47, %v176_v44  ;;  %v184_v50 = vpop.permute.xlu0 %183  ;;  %v207_v55 = vsel %vm199_vm4, %v195_v42, %v203_v48 }
 0x233   :  { %v194_v52 = vadd.f32 %v184_v50, %v174_v46  ;;  %v205_v58 = vsel %vm197_vm5, %v193_v45, %v201_v51 }
 0x234   :  { %vm200_vm6 = vcmp.ge.f32.partialorder %v196_v49, 0.0  ;;  %v204_v53 = vmul.f32 0.2, %v196_v49 }
 0x235   :  { %vm198_vm7 = vcmp.ge.f32.partialorder %v194_v52, 0.0  ;;  %v202_v54 = vmul.f32 0.2, %v194_v52 }
 0x236   :  { %v208_v56 = vsel %vm200_vm6, %v196_v49, %v204_v53 }
 0x237   :  { %v210_v57 = vpack.c.bf16 %v208_v56, %v207_v55  ;;  %v206_v59 = vsel %vm198_vm7, %v194_v52, %v202_v54 }
 0x238   :  { %v209_v60 = vpack.c.bf16 %v206_v59, %v205_v58 }
 0x239   :  { %219 = vrot.lane.b32.xlu1 %v210_v57, %s344_s5 }
 0x23a   :  { %217 = vrot.lane.b32.xlu0 %v209_v60, %s344_s5 }
 0x2ab   :  { %v220_v62 = vpop.permute.xlu1 %219 }
 0x2ac   :  { %v218_v61 = vpop.permute.xlu0 %217 }
 0x2ad   :  { %333 = vmatprep.mubr.msk.bf16.mxu0 %vm233_vm8, %v218_v61 }
 0x2ae   :  { %334 = vmatmul.mubr.msk.bf16.vlgmr.msra.gmra.mrb[4].mxu0 %vm233_vm8, %v220_v62 }
 0x381   :  { %v335_v63 = vpop.f32.mrb[4].mxu0 }
 0x382   :  { %292 = vst.msk [vmem:[%s445_s6 + $0x10] sm:$0xff] %vm289_vm9, %v335_v63  ;;  %v274_v0 = vpop.f32.mrb[5].mxu0 }
 0x383   :  { %290 = vst.msk [vmem:[%s445_s6] sm:$0xff] %vm289_vm9, %v274_v0  ;;  %v336_v1 = vpop.f32.mrb[6].mxu0 }
 0x384   :  { %293 = vst.msk [vmem:[%s445_s6 + $0x18] sm:$0xff] %vm289_vm9, %v336_v1  ;;  %v277_v2 = vpop.f32.mrb[7].mxu0 }
 0x385   :  { %291 = vst.msk [vmem:[%s445_s6 + $0x8] sm:$0xff] %vm289_vm9, %v277_v2 }

// kernel: gat_forward.4
= control target key start
LH: loop header
LB: loop body
LE: loop exit
PB: predicated region body
PF: predicated region fallthrough
CT: control target
= control target key end

     0   :  { %vm41_vm0 = vcmask 1043456   ;;  %vm90_vm1 = vcmask 1041408   ;;  %v273_v0 = vmov 0.0   ;;  %vm274_vm2 = vmmov 0   ;;  %s276_s18 = smov 4   ;;  %s366_s3 = inlined_call_operand.vmem [shape: bf16[8,16], index: 3, kind: input, shape index: {}]   ;;  %s367_s2 = inlined_call_operand.vmem [shape: bf16[4,16], index: 2, kind: input, shape index: {}]   ;;  %s368_s1 = inlined_call_operand.vmem [shape: f32[16,8], index: 1, kind: input, shape index: {}]   ;;  %s369_s0 = inlined_call_operand.vmem [shape: f32[16,4], index: 0, kind: input, shape index: {}]   ;;  %s370_s5 = inlined_call_operand.vmem [shape: bf16[16,64], index: 5, kind: input, shape index: {}]   ;;  %s371_s4 = inlined_call_operand.vmem [shape: f32[1,16], index: 4, kind: input, shape index: {}]   ;;  %s372_s6 = inlined_call_operand.vmem [shape: f32[1,64], index: 6, kind: input, shape index: {}]   ;;  %s373_s8 = inlined_call_operand.vmem [shape: f32[16,36], index: 8, kind: output, shape index: {1}]   ;;  %s374_s7 = inlined_call_operand.vmem [shape: f32[16,36], index: 7, kind: output, shape index: {0}]  }
   0x1   :  { %250 = vmatprep.subr.bf16.mxu0 %v273_v0  ;;  %256 = vmatprep.subr.bf16.mxu1 %v273_v0  ;;  %v36_v1 = vld [vmem:[%s366_s3] sm:$0xf]  ;;  %v34_v6 = vld [vmem:[%s368_s1 + $0x8] sm:$0xff]  ;;  %vm37_vm3 = vcmask 64512   ;;  %vm86_vm4 = vcmask 31744   ;;  %vm162_vm5 = vcmask 130048  }
   0x2   :  { %v32_v2 = vld [vmem:[%s367_s2] sm:$0x3]  ;;  %v43_v4 = vsel %vm41_vm0, %v36_v1, 0  ;;  %252 = vmatprep.mubr.msk.bf16.mxu0 %vm274_vm2, %v273_v0  ;;  %258 = vmatprep.mubr.msk.bf16.mxu1 %vm274_vm2, %v273_v0  ;;  %v30_v8 = vld [vmem:[%s369_s0 + $0x8] sm:$0xff]  ;;  %vm217_vm6 = vcmask 293888  }
   0x3   :  { %v33_v3 = vld [vmem:[%s368_s1] sm:$0xff]  ;;  %v92_v5 = vsel %vm90_vm1, %v32_v2, 0  ;;  %251 = vmatpush3.bf16.msra.mxu0 %v43_v4 }
   0x4   :  { %v29_v7 = vld [vmem:[%s369_s0] sm:$0xff]  ;;  %257 = vmatpush3.bf16.msra.mxu1 %v92_v5  ;;  %v35_v9 = vpack.c.bf16 %v34_v6, %v33_v3  ;;  %262 = vmatprep.subr.bf16.mxu0 %v273_v0 }
   0x5   :  { %v31_v10 = vpack.c.bf16 %v30_v8, %v29_v7  ;;  %v272_v11 = vld [vmem:[%s370_s5] sm:$0xff]  }
   0x6   :  { %253 = vmatmul.mubr.msk.bf16.vlgmr.msra.gmra.mrb[0].mxu0 %vm37_vm3, %v35_v9  ;;  %v240_v14 = vld [vmem:[%s371_s4] ss:$0 sm:$0xff]  ;;  %s275_s4 = smov 100  }
   0x7   :  { %259 = vmatmul.mubr.msk.bf16.vlgmr.msra.gmra.mrb[0].mxu1 %vm86_vm4, %v31_v10  ;;  %264 = vmatprep.mubr.msk.bf16.mxu0 %vm274_vm2, %v273_v0  ;;  %v241_v28 = vld [vmem:[%s372_s6] ss:$0 sm:$0xff] }
   0x8   :  { %263 = vmatpush3.bf16.msra.mxu0 %v272_v11 }
  0xd9   :  { %v79_v12 = vpop.f32.mrb[0].mxu0 }
  0xda   :  { %v128_v13 = vpop.f32.mrb[0].mxu1  ;;  %v254_v16 = vpop.f32.mrb[1].mxu0 }
  0xdb   :  { %v129_v15 = vadd.f32 %v128_v13, %v79_v12  ;;  %v260_v17 = vpop.f32.mrb[1].mxu1  ;;  %v82_v18 = vpop.f32.mrb[2].mxu0 }
  0xdc   :  { %v131_v19 = vpop.f32.mrb[2].mxu1  ;;  %v255_v22 = vpop.f32.mrb[3].mxu0 }
  0xdd   :  { %v142_v20 = vadd.f32 %v240_v14, %v129_v15  ;;  %v132_v21 = vadd.f32 %v131_v19, %v82_v18  ;;  %v261_v23 = vpop.f32.mrb[3].mxu1 }
  0xdf   :  { %v143_v24 = vadd.f32 %v240_v14, %v132_v21  ;;  %v144_v25 = vmax.f32 %v142_v20, 0.0 }
  0xe1   :  { %v145_v26 = vmax.f32 %v143_v24, 0.0 }
  0xe3   :  { %v146_v27 = vpack.c.bf16 %v145_v26, %v144_v25 }
  0xe5   :  { %265 = vmatmul.mubr.msk.bf16.vlgmr.msra.gmra.mrb[4].mxu0 %vm162_vm5, %v146_v27 }
 0x1b8   :  { %v200_v29 = vpop.f32.mrb[4].mxu0 }
 0x1b9   :  { %v201_v30 = vadd.f32 %v241_v28, %v200_v29  ;;  %v266_v31 = vpop.f32.mrb[5].mxu0 }
 0x1ba   :  { %v203_v32 = vpop.f32.mrb[6].mxu0 }
 0x1bb   :  { %220 = vrot.lane.b32.xlu1 %v201_v30, %s275_s4  ;;  %209 = vrot.lane.b32.xlu0 %v201_v30, %s276_s18  ;;  %v267_v33 = vpop.f32.mrb[7].mxu0  ;;  %v204_v34 = vadd.f32 %v241_v28, %v203_v32 }
 0x1bf   :  { %222 = vrot.lane.b32.xlu1 %v204_v34, %s275_s4  ;;  %211 = vrot.lane.b32.xlu0 %v204_v34, %s276_s18 }
 0x22d   :  { %v221_v35 = vpop.permute.xlu1 %220  ;;  %v210_v36 = vpop.permute.xlu0 %209 }
 0x22e   :  { %v226_v37 = vsel %vm86_vm4, %v29_v7, %v221_v35  ;;  %v215_v38 = vsel %vm86_vm4, %v29_v7, %v210_v36 }
 0x22f   :  { %228 = vst.msk [vmem:[%s373_s8] sm:$0xff] %vm217_vm6, %v226_v37  ;;  %218 = vst.msk [vmem:[%s374_s7] sm:$0xff] %vm217_vm6, %v215_v38 }
 0x231   :  { %v223_v39 = vpop.permute.xlu1 %222  ;;  %v212_v40 = vpop.permute.xlu0 %211 }
 0x232   :  { %v227_v41 = vsel %vm86_vm4, %v30_v8, %v223_v39  ;;  %v216_v42 = vsel %vm86_vm4, %v30_v8, %v212_v40 }
 0x233   :  { %229 = vst.msk [vmem:[%s373_s8 + $0x8] sm:$0xff] %vm217_vm6, %v227_v41  ;;  %219 = vst.msk [vmem:[%s374_s7 + $0x8] sm:$0xff] %vm217_vm6, %v216_v42 }

// kernel: gat_forward.6
= control target key start
LH: loop header
LB: loop body
LE: loop exit
PB: predicated region body
PF: predicated region fallthrough
CT: control target
= control target key end

     0   :  { %s175_s25 = smov 124   ;;  %vm46_vm0 = vcmask 261120   ;;  %vm126_vm1 = vcmask 15360   ;;  %vm139_vm2 = vcmask 7168   ;;  %s259_s0 = inlined_call_operand.vmem [shape: f32[32,36], index: 0, kind: input, shape index: {}]   ;;  %s260_s3 = inlined_call_operand.vmem [shape: bf16[32,2], index: 3, kind: input, shape index: {}]   ;;  %s261_s2 = inlined_call_operand.vmem [shape: f32[32,2], index: 2, kind: input, shape index: {}]   ;;  %s262_s1 = inlined_call_operand.vmem [shape: f32[32,2], index: 1, kind: input, shape index: {}]   ;;  %s263_s4 = inlined_call_operand.vmem [shape: f32[32,1], index: 4, kind: output, shape index: {}]  }
   0x1   :  { %v18_v0 = vld [vmem:[%s259_s0] sm:$0xff]  ;;  %v19_v1 = vld [vmem:[%s259_s0 + $0x8] sm:$0xff]  ;;  %v20_v2 = vld [vmem:[%s259_s0 + $0x10] sm:$0xff] }
   0x2   :  { %v22_v3 = vpack.c.bf16 %v19_v1, %v18_v0  ;;  %v21_v4 = vld [vmem:[%s259_s0 + $0x18] sm:$0xff]  ;;  %v165_v5 = vld [vmem:[%s260_s3] sm:$0xff]   ;;  %v166_v7 = vld [vmem:[%s260_s3 + $0x8] sm:$0xff]  }
   0x3   :  { %v23_v6 = vpack.c.bf16 %v21_v4, %v20_v2  ;;  %156 = vmatprep.subr.bf16.mxu0 %v165_v5  ;;  %v104_v10 = vld [vmem:[%s261_s2 + $0x10] sm:$0xff]  ;;  %v102_v11 = vld [vmem:[%s261_s2] sm:$0xff]  ;;  %v103_v13 = vld [vmem:[%s261_s2 + $0x8] sm:$0xff] }
   0x4   :  { %30 = vrot.lane.b32.xlu0 %v22_v3, %s175_s25  ;;  %157 = vmatpush3.bf16.msra.mxu0 %v165_v5  ;;  %v108_v12 = vadd.f32 1e-16, %v104_v10  ;;  %v106_v14 = vadd.f32 1e-16, %v102_v11  ;;  %v107_v15 = vadd.f32 1e-16, %v103_v13 }
   0x5   :  { %158 = vmatprep.subr.bf16.mxu0 %v166_v7  ;;  %v105_v16 = vld [vmem:[%s261_s2 + $0x18] sm:$0xff]  ;;  %v116_v19 = vld [vmem:[%s262_s1 + $0x10] sm:$0xff]  ;;  %v114_v21 = vld [vmem:[%s262_s1] sm:$0xff] }
   0x6   :  { %167 = vrcp.f32 %v108_v12  ;;  %v109_v17 = vadd.f32 1e-16, %v105_v16  ;;  %v115_v24 = vld [vmem:[%s262_s1 + $0x8] sm:$0xff]  ;;  %v117_v31 = vld [vmem:[%s262_s1 + $0x18] sm:$0xff] }
   0x7   :  { %169 = vrcp.f32 %v106_v14 }
   0x8   :  { %32 = vrot.lane.b32.xlu0 %v23_v6, %s175_s25  ;;  %159 = vmatpush3.bf16.msra.mxu0 %v166_v7  ;;  %171 = vrcp.f32 %v107_v15 }
   0x9   :  { %173 = vrcp.f32 %v109_v17 }
  0x10   :  { %v168_v18 = vpop.eup %167 }
  0x11   :  { %v170_v20 = vpop.eup %169  ;;  %v120_v23 = vmul.f32 %v168_v18, %v116_v19 }
  0x12   :  { %v172_v22 = vpop.eup %171  ;;  %v118_v25 = vmul.f32 %v170_v20, %v114_v21 }
  0x13   :  { %v119_v27 = vmul.f32 %v172_v22, %v115_v24  ;;  %v174_v28 = vpop.eup %173 }
  0x14   :  { %v121_v36 = vmul.f32 %v174_v28, %v117_v31 }
  0x76   :  { %v31_v8 = vpop.permute.xlu0 %30 }
  0x77   :  { %160 = vmatprep.mubr.msk.bf16.mxu0 %vm46_vm0, %v31_v8 }
  0x7a   :  { %v33_v9 = vpop.permute.xlu0 %32 }
  0x7b   :  { %161 = vmatmul.mubr.msk.bf16.vlgmr.msra.gmra.mrb[0].mxu0 %vm46_vm0, %v33_v9 }
 0x14e   :  { %v162_v26 = vpop.f32.mrb[0].mxu0 }
 0x14f   :  { %v124_v29 = vmul.f32 %v162_v26, %v120_v23  ;;  %v87_v30 = vpop.f32.mrb[1].mxu0 }
 0x150   :  { %v122_v32 = vmul.f32 %v118_v25, %v87_v30  ;;  %v163_v33 = vpop.f32.mrb[2].mxu0 }
 0x151   :  { %v90_v34 = vpop.f32.mrb[3].mxu0  ;;  %v133_v35 = vsel %vm126_vm1, %v124_v29, 0.0  ;;  %v125_v39 = vmul.f32 %v163_v33, %v121_v36 }
 0x152   :  { %v123_v37 = vmul.f32 %v119_v27, %v90_v34  ;;  %134 = vadd.xlane.f32.xlu0 %v133_v35  ;;  %v127_v38 = vsel %vm126_vm1, %v122_v32, 0.0 }
 0x153   :  { %128 = vadd.xlane.f32.xlu1 %v127_v38  ;;  %v136_v41 = vsel %vm126_vm1, %v125_v39, 0.0 }
 0x154   :  { %v130_v40 = vsel %vm126_vm1, %v123_v37, 0.0 }
 0x157   :  { %131 = vadd.xlane.f32.xlu1 %v130_v40 }
 0x15b   :  { %137 = vadd.xlane.f32.xlu1 %v136_v41 }
 0x1df   :  { %v135_v42 = vpop.xlane.xlu0 %134 }
 0x1e0   :  { %142 = vst.msk [vmem:[%s263_s4 + $0x10] sm:$0xff] %vm139_vm2, %v135_v42  ;;  %v129_v43 = vpop.xlane.xlu1 %128 }
 0x1e1   :  { %140 = vst.msk [vmem:[%s263_s4] sm:$0xff] %vm139_vm2, %v129_v43 }
 0x1e4   :  { %v132_v44 = vpop.xlane.xlu1 %131 }
 0x1e5   :  { %141 = vst.msk [vmem:[%s263_s4 + $0x8] sm:$0xff] %vm139_vm2, %v132_v44 }
 0x1e8   :  { %v138_v45 = vpop.xlane.xlu1 %137 }
 0x1e9   :  { %143 = vst.msk [vmem:[%s263_s4 + $0x18] sm:$0xff] %vm139_vm2, %v138_v45 }

// kernel: gat_forward.7
= control target key start
LH: loop header
LB: loop body
LE: loop exit
PB: predicated region body
PF: predicated region fallthrough
CT: control target
= control target key end

     0   :  { %14 = vsyncpa [#allocation3], 0  ;;  %vm32_vm0 = vcmask 25600   ;;  %s428_s0 = inlined_call_operand.vmem [shape: f32[2,4], index: 0, kind: input, shape index: {}]   ;;  %s429_s1 = inlined_call_operand.vmem [shape: f32[1,4], index: 1, kind: input, shape index: {}]   ;;  %s430_s2 = inlined_call_operand.vmem [shape: f32[1,4], index: 2, kind: input, shape index: {}]   ;;  %s431_s3 = inlined_call_operand.vmem [shape: bf16[4,4], index: 3, kind: input, shape index: {}]   ;;  %s432_s4 = inlined_call_operand.vmem [shape: f32[1,4], index: 4, kind: input, shape index: {}]   ;;  %s433_s5 = inlined_call_operand.vmem [shape: bf16[4,3], index: 5, kind: input, shape index: {}]   ;;  %s434_s6 = inlined_call_operand.vmem [shape: f32[1,3], index: 6, kind: input, shape index: {}]   ;;  %s435_s7 = inlined_call_operand.hbm [shape: f32[2,3], index: 7, kind: output, shape index: {0}]   ;;  %s436_s8 = inlined_call_operand.hbm [shape: f32[2,4], index: 8, kind: output, shape index: {1}]  }
   0x1   :  { %v31_v0 = vld [vmem:[%s428_s0] sm:$0x3] }
   0x2   :  { %15 = vsyncpa [#allocation5], 0  ;;  %v33_v1 = vsel %vm32_vm0, %v31_v0, 0.0  ;;  %v64_v7 = vld [vmem:[%s431_s3] sm:$0x3]  ;;  %vm76_vm1 = vcmask 1041408  }
   0x3   :  { %34 = vadd.xlane.f32.xlu0 %v33_v1  ;;  %v317_v8 = vmov 0.0   ;;  %v78_v9 = vsel %vm76_vm1, %v64_v7, 0  ;;  %vm318_vm2 = vmmov 0   ;;  %v233_v14 = vld [vmem:[%s429_s1] ss:$0 sm:$0xff]  ;;  %vm72_vm3 = vcmask 31744  }
   0x4   :  { %243 = vmatprep.subr.bf16.mxu0 %v317_v8  ;;  %245 = vmatprep.mubr.msk.bf16.mxu0 %vm318_vm2, %v317_v8  ;;  %v234_v16 = vld [vmem:[%s430_s2] ss:$0 sm:$0xff]  ;;  %vm176_vm4 = vcmask 17408  }
   0x5   :  { %244 = vmatpush3.bf16.msra.mxu0 %v78_v9  ;;  %249 = vmatprep.subr.bf16.mxu1 %v317_v8  ;;  %v122_v20 = vld [vmem:[%s433_s5] sm:$0x3] }
   0x6   :  { %251 = vmatprep.mubr.msk.bf16.mxu1 %vm318_vm2, %v317_v8  ;;  %v134_v21 = vsel %vm76_vm1, %v122_v20, 0  ;;  %v235_v22 = vld [vmem:[%s432_s4] ss:$0 sm:$0xff]  ;;  %s319_s4 = smov [#allocation2]  }
   0x7   :  { %250 = vmatpush3.bf16.msra.mxu1 %v134_v21  ;;  %v237_v30 = vld [vmem:[%s434_s6] ss:$0 sm:$0xff]  ;;  %s211_s5 = sshll.u32 %s319_s4, 4  ;;  %s320_s6 = smov [#allocation4]   ;;  %s212_s5 = int_to_ptr.vmem [resolvable:$true] %s211_s5 }
   0x8   :  { %s221_s15 = sshll.u32 %s320_s6, 4  ;;  %s269_s16 = scalar_lea.vmem %s212_s5, 32  ;;  %s222_s15 = int_to_ptr.vmem [resolvable:$true] %s221_s15 }
   0x9   :  { %p270_p0 = scmp.ne.s32.totalorder %s212_s5, %s269_s16  ;;  %p274_p1 = scmp.lt.s32.totalorder %s212_s5, %s212_s5 }
   0xa   :  { %p275_p2 = scmp.lt.s32.totalorder %s269_s16, %s269_s16 }
   0xc   :  { %p276_p3 = por %p275_p2, %p274_p1 }
   0xe   :  { %p277_p4 = pnand %p276_p3, %p270_p0 }
  0x90   :  { %v35_v2 = vpop.xlane.xlu0 %34 }
  0x91   :  { %v37_v3 = vmul.f32 0.25, %v35_v2 }
  0x93   :  { %v38_v4 = vsub.f32 %v31_v0, %v37_v3 }
  0x95   :  { %v39_v5 = vmul.f32 %v38_v4, %v38_v4 }
  0x97   :  { %v40_v6 = vsel %vm32_vm0, %v39_v5, 0.0 }
  0x98   :  { %41 = vadd.xlane.f32.xlu0 %v40_v6 }
 0x125   :  { %v42_v10 = vpop.xlane.xlu0 %41 }
 0x126   :  { %v43_v11 = vmul.f32 0.25, %v42_v10 }
 0x128   :  { %v44_v12 = vadd.f32 1e-05, %v43_v11 }
 0x12a   :  { %259 = vrsqrt.f32 %v44_v12 }
 0x134   :  { %v260_v13 = vpop.eup %259 }
 0x135   :  { %v46_v15 = vmul.f32 %v260_v13, %v38_v4 }
 0x137   :  { %v54_v17 = vmul.f32 %v233_v14, %v46_v15 }
 0x139   :  { %v381_v18 = vadd.f32 %v234_v16, %v54_v17 }
 0x13b   :  { %v63_v19 = vpack.c.bf16 %v381_v18, %v381_v18  ;;  %v191_v37 = vsel %vm32_vm0, %v381_v18, -inf }
 0x13d   :  { %246 = vmatmul.mubr.msk.bf16.vlgmr.msra.gmra.mrb[0].mxu0 %vm72_vm3, %v63_v19 }
 0x210   :  { %v114_v23 = vpop.f32.mrb[0].mxu0 }
 0x211   :  { %v115_v24 = vadd.f32 %v235_v22, %v114_v23  ;;  %v247_v25 = vpop.f32.mrb[1].mxu0 }
 0x212   :  { %v117_v26 = vpop.f32.mrb[2].mxu0 }
 0x213   :  { %v120_v27 = vmax.f32 %v115_v24, 0.0  ;;  %v248_v28 = vpop.f32.mrb[3].mxu0 }
 0x215   :  { %v121_v29 = vpack.c.bf16 %v120_v27, %v120_v27 }
 0x217   :  { %252 = vmatmul.mubr.msk.bf16.vlgmr.msra.gmra.mrb[0].mxu1 %vm72_vm3, %v121_v29 }
 0x2ea   :  { %v170_v31 = vpop.f32.mrb[0].mxu1 }
 0x2eb   :  { %v171_v32 = vadd.f32 %v237_v30, %v170_v31  ;;  %v253_v33 = vpop.f32.mrb[1].mxu1 }
 0x2ec   :  { %v173_v34 = vpop.f32.mrb[2].mxu1 }
 0x2ed   :  { %v254_v35 = vpop.f32.mrb[3].mxu1  ;;  %v177_v36 = vsel %vm176_vm4, %v171_v32, -inf }
 0x2ee   :  { %178 = vmax.xlane.f32.xlu1 %v177_v36 }
 0x2f2   :  { %192 = vmax.xlane.f32.xlu1 %v191_v37 }
 0x37b   :  { %v179_v38 = vpop.xlane.xlu1 %178 }
 0x37c   :  { %v180_v39 = vsub.f32 %v171_v32, %v179_v38 }
 0x37e   :  { %v181_v40 = vmul.f32 1.442695, %v180_v39 }
 0x37f   :  { %v193_v41 = vpop.xlane.xlu1 %192 }
 0x380   :  { %261 = vpow2.f32 %v181_v40  ;;  %v194_v42 = vsub.f32 %v381_v18, %v193_v41 }
 0x382   :  { %v195_v43 = vmul.f32 1.442695, %v194_v42 }
 0x384   :  { %263 = vpow2.f32 %v195_v43 }
 0x38a   :  { %v262_v44 = vpop.eup %261 }
 0x38b   :  { %v183_v45 = vsel %vm176_vm4, %v262_v44, 0.0 }
 0x38c   :  { %184 = vadd.xlane.f32.xlu0 %v183_v45 }
 0x38e   :  { %v264_v46 = vpop.eup %263 }
 0x38f   :  { %v197_v47 = vsel %vm32_vm0, %v264_v46, 0.0 }
 0x390   :  { %198 = vadd.xlane.f32.xlu1 %v197_v47 }
 0x419   :  { %v185_v48 = vpop.xlane.xlu0 %184 }
 0x41a   :  { %265 = vlog2.f32 %v185_v48 }
 0x41d   :  { %v199_v49 = vpop.xlane.xlu1 %198 }
 0x41e   :  { %267 = vlog2.f32 %v199_v49 }
 0x424   :  { %v266_v50 = vpop.eup %265 }
 0x425   :  { %v187_v51 = vmul.f32 0.6931472, %v266_v50 }
 0x427   :  { %v188_v52 = vadd.f32 %v187_v51, %v179_v38 }
 0x428   :  { %v268_v53 = vpop.eup %267 }
 0x429   :  { %v201_v54 = vmul.f32 0.6931472, %v268_v53  ;;  %v189_v55 = vsub.f32 %v171_v32, %v188_v52 }
 0x42b   :  { %v202_v56 = vadd.f32 %v201_v54, %v193_v41  ;;  %190 = vst.msk [vmem:[#allocation2] sm:$0x3] %vm176_vm4, %v189_v55 }
 0x42c   :  { %280 = shalt.err (!%p277_p4)
}
 0x42d   :  { %s281_s19 = scalar_lea.hbm %s435_s7, 32 }
 0x42e   :  { %p282_p5 = scmp.ne.s32.totalorder %s435_s7, %s281_s19  ;;  %p285_p6 = scmp.lt.u32.totalorder %s281_s19, %s435_s7 }
 0x430   :  { %p287_p7 = pnand %p285_p6, %p282_p5 }
 0x432   :  { %290 = shalt.err (!%p287_p7)
}
 0x433   :  { %214 = dma.vmem_to_hbm [thread:$0]  %s212_s5, 32, %s435_s7, [#allocation3]   ;;  %v203_v57 = vsub.f32 %v381_v18, %v202_v56 }
 0x434   :  { %s291_s26 = scalar_lea.vmem %s222_s15, 32  ;;  %p296_p9 = scmp.lt.s32.totalorder %s222_s15, %s222_s15 }
 0x435   :  { %204 = vst.msk [vmem:[#allocation4] sm:$0x3] %vm32_vm0, %v203_v57  ;;  %p292_p8 = scmp.ne.s32.totalorder %s222_s15, %s291_s26  ;;  %p297_p10 = scmp.lt.s32.totalorder %s291_s26, %s291_s26 }
 0x437   :  { %p298_p11 = por %p297_p10, %p296_p9 }
 0x439   :  { %p299_p12 = pnand %p298_p11, %p292_p8 }
 0x43b   :  { %302 = shalt.err (!%p299_p12)
}
 0x43c   :  { %s303_s29 = scalar_lea.hbm %s436_s8, 32 }
 0x43d   :  { %p304_p13 = scmp.ne.s32.totalorder %s436_s8, %s303_s29  ;;  %p307_p0 = scmp.lt.u32.totalorder %s303_s29, %s436_s8 }
 0x43f   :  { %p309_p1 = pnand %p307_p0, %p304_p13 }
 0x441   :  { %312 = shalt.err (!%p309_p1)
}
 0x442   :  { %224 = dma.vmem_to_hbm [thread:$0]  %s222_s15, 32, %s436_s8, [#allocation5]  }
 0x443   :  { %313 = dma.done.wait [#allocation3], 32  }
 0x444   :  { %314 = vsyncadd [#allocation3], 4294967264 }
 0x445   :  { %315 = dma.done.wait [#allocation5], 32  }
 0x446   :  { %316 = vsyncadd [#allocation5], 4294967264 }
 0x447   :  { %231 = vsyncpa [#allocation3], 1 }
 0x448   :  { %232 = vsyncpa [#allocation5], 1 }

</bundles_post_ra>
